<compile_context>
chip_gen: v7x
topology: tpu7x:2x2x1
jax: 0.10.0
libtpu: 0.0.40
codegen_flags: <defaults>
</compile_context>

<pallas_src>
import functools

import jax
import jax.numpy as jnp
from jax.experimental import pallas as pl
from jax.experimental.pallas import tpu as pltpu


def _round_up(x, m):
    return ((x + m - 1) // m) * m


def _pad_to(a, shape):
    return jnp.pad(a, [(0, t - s) for s, t in zip(a.shape, shape)])


def _vmem_capacity_bytes():
    try:
        return int(pltpu.get_tpu_info().vmem_capacity_bytes)
    except Exception:
        return 64 << 20  # conservative fallback (v7x-sized)


_VMEM_CAP = _vmem_capacity_bytes()
# Leave headroom for the compiler's own scratch: ~96 MiB on 128 MiB chips,
# ~48 MiB on v7x's 64 MiB.
_VMEM_BUDGET = max(32 << 20, (_VMEM_CAP * 3) // 4)


# --------------------------------------------------------------------------- #
# Kernels
# --------------------------------------------------------------------------- #
def _prelude_kernel(xh_ref, c0_ref, enc_ref,
                    w_cat_ref, b_g_ref,
                    w1c_ref, w1h_ref, b1_ref,
                    out1_ref, h1_ref, c1_ref):
    """LSTM cell + Luong dot attention + dense1; runs once (gridless)."""
    Hp = c0_ref.shape[-1]
    wdt = w_cat_ref.dtype

    # Fused LSTM cell: single (Bp, 2Hp) @ (2Hp, 4Hp) matmul, f32 accumulate.
    gates = jnp.dot(xh_ref[...].astype(wdt), w_cat_ref[...],
                    preferred_element_type=jnp.float32) + b_g_ref[...]
    # PyTorch gate order i, f, g, o; each slice is lane-aligned (Hp % 128 == 0).
    i = jax.nn.sigmoid(gates[:, 0 * Hp:1 * Hp])
    f = jax.nn.sigmoid(gates[:, 1 * Hp:2 * Hp])
    g = jnp.tanh(gates[:, 2 * Hp:3 * Hp])
    o = jax.nn.sigmoid(gates[:, 3 * Hp:4 * Hp])
    c1 = f * c0_ref[...] + i * g
    h1 = o * jnp.tanh(c1)                                        # (Bp, Hp)

    # Luong dot attention; both contractions on the MXU (batched matmuls).
    enc = enc_ref[...]                                           # (Bp, S, Hp)
    scores = jnp.einsum('bqd,bsd->bqs',
                        h1[:, None, :].astype(enc.dtype), enc,
                        preferred_element_type=jnp.float32)[:, 0, :]   # (Bp, S)
    scores = scores - jnp.max(scores, axis=-1, keepdims=True)
    e = jnp.exp(scores)
    # Exact normalization: the prelude runs once, approx reciprocal buys nothing.
    alpha = e / jnp.sum(e, axis=-1, keepdims=True)
    context = jnp.einsum('bqs,bsd->bqd',
                         alpha[:, None, :].astype(enc.dtype), enc,
                         preferred_element_type=jnp.float32)[:, 0, :]  # (Bp, Hp)

    # dense1 without materializing concat([context, h1]).
    out1 = (jnp.dot(context.astype(wdt), w1c_ref[...],
                    preferred_element_type=jnp.float32)
            + jnp.dot(h1.astype(wdt), w1h_ref[...],
                      preferred_element_type=jnp.float32)
            + b1_ref[...])                                       # (Bp, Hp)

    out1_ref[...] = out1.astype(out1_ref.dtype)   # stored in weight dtype
    h1_ref[...] = h1
    c1_ref[...] = c1


def _dense2_kernel(out1_ref, w2_ref, b2_ref, pred_ref):
    """One vocab tile of dense2: a single vmatmul + bias add (DMA-limited)."""
    pred_ref[...] = (jnp.dot(out1_ref[...], w2_ref[...],
                             preferred_element_type=jnp.float32) + b2_ref[...])


# --------------------------------------------------------------------------- #
# Hoisted packing (run once per model / per sequence, NOT per decode step)
# --------------------------------------------------------------------------- #
def pack_decoder_params(params, *, weight_dtype=jnp.bfloat16, tn=2048,
                        batch_hint=8):
    """Pack + pad + cast all weights once.  Returns (packed_arrays, meta)."""
    H = params["w_hh"].shape[-1]
    V = params["w2"].shape[0]
    Hp = _round_up(H, 128)
    wbytes = jnp.dtype(weight_dtype).itemsize
    Bp_hint = _round_up(batch_hint, 8)

    # Size the dense2 tile: largest lane-aligned tn whose double-buffered
    # streamed tiles (w2 tile + b2 tile + pred tile) fit in ~half the budget.
    per_col = 2 * (Hp * wbytes + 4 + Bp_hint * 4)
    tn_cap = max(128, ((_VMEM_BUDGET // 2) // per_col) // 128 * 128)
    tn = min(_round_up(tn, 128), tn_cap, _round_up(V, 128))
    Vp = _round_up(V, tn)

    def gate_pack_t(w):   # (4H, H) -> (Hp, 4Hp): transposed, per-gate padded
        blocks = [_pad_to(w[k * H:(k + 1) * H, :].T, (Hp, Hp)) for k in range(4)]
        return jnp.concatenate(blocks, axis=1)

    w_cat = jnp.concatenate([gate_pack_t(params["w_ih"]),
                             gate_pack_t(params["w_hh"])],
                            axis=0).astype(weight_dtype)              # (2Hp, 4Hp)
    b_sum = params["b_ih"] + params["b_hh"]
    b_gates = jnp.concatenate(
        [_pad_to(b_sum[k * H:(k + 1) * H], (Hp,)) for k in range(4)])[None, :]

    w1c_t = _pad_to(params["w1"][:, :H].T, (Hp, Hp)).astype(weight_dtype)
    w1h_t = _pad_to(params["w1"][:, H:].T, (Hp, Hp)).astype(weight_dtype)
    b1 = _pad_to(params["b1"], (Hp,))[None, :]                        # (1, Hp)

    w2_t = _pad_to(params["w2"].T, (Hp, Vp)).astype(weight_dtype)     # (Hp, Vp)
    b2 = _pad_to(params["b2"], (Vp,))[None, :]                        # (1, Vp)

    embedding = _pad_to(params["embedding"], (V, Hp))                 # (V, Hp)

    packed = dict(embedding=embedding, w_cat=w_cat, b_gates=b_gates,
                  w1c_t=w1c_t, w1h_t=w1h_t, b1=b1, w2_t=w2_t, b2=b2)
    meta = dict(H=int(H), V=int(V), Hp=int(Hp), Vp=int(Vp), tn=int(tn))
    return packed, meta


def pack_encoder_output(encoder_output, Hp, weight_dtype=jnp.bfloat16):
    """(S, B, H) -> padded (Bp, S, Hp); done once per sequence."""
    S, B, H = encoder_output.shape
    Bp = _round_up(B, 8)
    enc = jnp.transpose(encoder_output, (1, 0, 2))                    # (B, S, H)
    return _pad_to(enc, (Bp, S, Hp)).astype(weight_dtype)


# --------------------------------------------------------------------------- #
# Per-step decoder (jitted; only gather + tiny padding + two pallas_calls)
# --------------------------------------------------------------------------- #
@functools.partial(jax.jit, static_argnames=("tn",))
def decoder_step(packed, token_ids, hidden, cell, enc_packed, *, tn):
    """token_ids: (B,) int32; hidden/cell: (1, B, H); enc_packed: (Bp, S, Hp)."""
    B = token_ids.shape[0]
    H = hidden.shape[-1]
    Hp = packed["w1c_t"].shape[0]
    Vp = packed["w2_t"].shape[1]
    V = packed["embedding"].shape[0]
    Bp = enc_packed.shape[0]
    S = enc_packed.shape[1]
    wdt = packed["w2_t"].dtype
    wbytes = jnp.dtype(wdt).itemsize
    grid_v = Vp // tn

    # ---- per-step glue (cheap) ----------------------------------------------
    embedded = jnp.take(packed["embedding"], token_ids, axis=0)       # (B, Hp)
    h0 = hidden[0]
    c0 = cell[0]
    xh = jnp.concatenate([_pad_to(embedded, (Bp, Hp)),
                          _pad_to(h0, (Bp, Hp))], axis=-1)            # (Bp, 2Hp)
    c0_p = _pad_to(c0, (Bp, Hp))

    # ---- call 1: LSTM + attention + dense1 (gridless, everything resident) --
    prelude_bytes = (xh.size * 4 + c0_p.size * 4 + enc_packed.size * wbytes
                     + 2 * Hp * 4 * Hp * wbytes + 4 * Hp * 4
                     + 2 * Hp * Hp * wbytes + Hp * 4
                     + Bp * Hp * (wbytes + 8))
    vmem_prelude = int(min(max(2 * prelude_bytes + (8 << 20), 32 << 20),
                           _VMEM_BUDGET))
    out1, h1_p, c1_p = pl.pallas_call(
        _prelude_kernel,
        out_shape=(jax.ShapeDtypeStruct((Bp, Hp), wdt),          # out1 (wdt)
                   jax.ShapeDtypeStruct((Bp, Hp), jnp.float32),  # h1
                   jax.ShapeDtypeStruct((Bp, Hp), jnp.float32)), # c1
        compiler_params=pltpu.CompilerParams(vmem_limit_bytes=vmem_prelude),
    )(xh, c0_p, enc_packed, packed["w_cat"], packed["b_gates"],
      packed["w1c_t"], packed["w1h_t"], packed["b1"])

    # ---- call 2: dense2, streamed over V tiles; parallel grid (v7x 2 TCs) ---
    streamed = 2 * (Hp * tn * wbytes + tn * 4 + Bp * tn * 4)
    vmem_dense2 = int(min(max(2 * Bp * Hp * wbytes + streamed + (8 << 20),
                              32 << 20), _VMEM_BUDGET))
    grid_spec = pltpu.PrefetchScalarGridSpec(
        num_scalar_prefetch=0,
        grid=(grid_v,),
        in_specs=[
            pl.BlockSpec((Bp, Hp), lambda j: (0, 0)),            # out1 (invariant)
            pl.BlockSpec((Hp, tn), lambda j: (0, j)),            # w2 tile
            pl.BlockSpec((1, tn), lambda j: (0, j)),             # b2 tile
        ],
        out_specs=pl.BlockSpec((Bp, tn), lambda j: (0, j)),      # pred tile
    )
    pred_p = pl.pallas_call(
        _dense2_kernel,
        out_shape=jax.ShapeDtypeStruct((Bp, Vp), jnp.float32),
        grid_spec=grid_spec,
        compiler_params=pltpu.CompilerParams(
            dimension_semantics=("parallel",),
            vmem_limit_bytes=vmem_dense2),
    )(out1, packed["w2_t"], packed["b2"])

    pred = pred_p[:B, :V]
    return pred, h1_p[:B, :H][None], c1_p[:B, :H][None]


def decoder_forward(params, token_ids, hidden, cell, encoder_output,
                    *, weight_dtype=jnp.bfloat16, tn=2048):
    """Convenience wrapper.  In a real decode loop, call pack_* once (hoisted)
    and then decoder_step per step — as demonstrated in __main__."""
    packed, meta = pack_decoder_params(params, weight_dtype=weight_dtype, tn=tn,
                                       batch_hint=token_ids.shape[0])
    enc_p = pack_encoder_output(encoder_output, meta["Hp"], weight_dtype)
    return decoder_step(packed, token_ids, hidden, cell, enc_p, tn=meta["tn"])


# --------------------------------------------------------------------------- #
# Reference + init
# --------------------------------------------------------------------------- #
def decoder_reference(params, token_ids, hidden, cell, encoder_output):
    """Pure-JAX reference of the same forward semantics (for validation)."""
    H = hidden.shape[-1]
    x = jnp.take(params["embedding"], token_ids, axis=0)
    h0, c0 = hidden[0], cell[0]
    gates = x @ params["w_ih"].T + h0 @ params["w_hh"].T + params["b_ih"] + params["b_hh"]
    i = jax.nn.sigmoid(gates[:, 0 * H:1 * H])
    f = jax.nn.sigmoid(gates[:, 1 * H:2 * H])
    g = jnp.tanh(gates[:, 2 * H:3 * H])
    o = jax.nn.sigmoid(gates[:, 3 * H:4 * H])
    c1 = f * c0 + i * g
    h1 = o * jnp.tanh(c1)
    enc = jnp.transpose(encoder_output, (1, 0, 2))
    scores = jnp.einsum("bd,bsd->bs", h1, enc)
    alpha = jax.nn.softmax(scores, axis=-1)
    context = jnp.einsum("bs,bsd->bd", alpha, enc)
    concat = jnp.concatenate([context, h1], axis=-1)
    out1 = concat @ params["w1"].T + params["b1"]
    pred = out1 @ params["w2"].T + params["b2"]
    return pred, h1[None], c1[None]


def init_params(key, vocab_size, hidden_size, pad_token):
    V, H = vocab_size, hidden_size
    ks = jax.random.split(key, 9)
    scale = 1.0 / jnp.sqrt(H)
    emb = jax.random.normal(ks[0], (V, H), jnp.float32)
    emb = emb.at[pad_token].set(0.0)  # padding_idx row is zero in nn.Embedding
    return {
        "embedding": emb,
        "w_ih": jax.random.uniform(ks[1], (4 * H, H), jnp.float32, -scale, scale),
        "w_hh": jax.random.uniform(ks[2], (4 * H, H), jnp.float32, -scale, scale),
        "b_ih": jax.random.uniform(ks[3], (4 * H,), jnp.float32, -scale, scale),
        "b_hh": jax.random.uniform(ks[4], (4 * H,), jnp.float32, -scale, scale),
        "w1": jax.random.uniform(ks[5], (H, 2 * H), jnp.float32, -scale, scale),
        "b1": jax.random.uniform(ks[6], (H,), jnp.float32, -scale, scale),
        "w2": jax.random.uniform(ks[7], (V, H), jnp.float32, -scale, scale),
        "b2": jax.random.uniform(ks[8], (V,), jnp.float32, -scale, scale),
    }


if __name__ == "__main__":
    V, H, B, S = 64, 32, 4, 8
    pad_token = 0
    key = jax.random.PRNGKey(0)
    k_p, k_tok, k_h, k_c, k_enc = jax.random.split(key, 5)

    params = init_params(k_p, V, H, pad_token)
    token_ids = jax.random.randint(k_tok, (B,), 0, V, jnp.int32)       # `input` (B,)
    hidden = jax.random.normal(k_h, (1, B, H), jnp.float32)            # (num_layers, B, H)
    cell = jax.random.normal(k_c, (1, B, H), jnp.float32)
    encoder_output = jax.random.normal(k_enc, (S, B, H), jnp.float32)  # (S, B, H)

    pred_ref, h_ref, c_ref = decoder_reference(params, token_ids, hidden, cell,
                                               encoder_output)

    # ---- default (bf16 weights) path: packing hoisted out of the step -------
    packed, meta = pack_decoder_params(params, weight_dtype=jnp.bfloat16,
                                       batch_hint=B)
    enc_p = pack_encoder_output(encoder_output, meta["Hp"], jnp.bfloat16)
    pred, h_new, c_new = decoder_step(packed, token_ids, hidden, cell, enc_p,
                                      tn=meta["tn"])
    jax.block_until_ready((pred, h_new, c_new))
    assert pred.shape == (B, V) and h_new.shape == (1, B, H) and c_new.shape == (1, B, H)
    # bf16 weights (f32 accumulate) -> loose tolerances vs the f32 reference.
    assert jnp.allclose(h_new, h_ref, rtol=3e-2, atol=3e-2)
    assert jnp.allclose(c_new, c_ref, rtol=3e-2, atol=3e-2)
    assert jnp.allclose(pred, pred_ref, rtol=5e-2, atol=5e-2)

    # ---- f32 path: exact math (no approx reciprocal) -> tight tolerances ----
    packed32, meta32 = pack_decoder_params(params, weight_dtype=jnp.float32,
                                           batch_hint=B)
    enc32 = pack_encoder_output(encoder_output, meta32["Hp"], jnp.float32)
    pred32, h32, c32 = decoder_step(packed32, token_ids, hidden, cell, enc32,
                                    tn=meta32["tn"])
    jax.block_until_ready((pred32, h32, c32))
    assert jnp.allclose(h32, h_ref, rtol=1e-4, atol=1e-4)
    assert jnp.allclose(c32, c_ref, rtol=1e-4, atol=1e-4)
    assert jnp.allclose(pred32, pred_ref, rtol=1e-4, atol=1e-4)

    print("KERNEL_OK")
</pallas_src>

<mosaic_0001>
module attributes {stable_mosaic.version = 11 : i64} {
  func.func @_dense2_kernel(%arg0: i32, %arg1: memref<8x128xbf16, #tpu.memory_space<vmem>>, %arg2: memref<128x128xbf16, #tpu.memory_space<vmem>>, %arg3: memref<1x128xf32, #tpu.memory_space<vmem>>, %arg4: memref<8x128xf32, #tpu.memory_space<vmem>>) attributes {dimension_semantics = [#tpu.dimension_semantics<parallel>], iteration_bounds = array<i64: 1>, scalar_prefetch = 0 : i64, scratch_operands = 0 : i64, tpu.core_type = #tpu.core_type<tc>, window_params = [{pipeline_mode = #tpu.pipeline_mode<synchronous>, transform_indices = @transform_0, window_bounds = array<i64: 8, 128>}, {transform_indices = @transform_1, window_bounds = array<i64: 128, 128>}, {transform_indices = @transform_2, window_bounds = array<i64: 1, 128>}, {transform_indices = @transform_3, window_bounds = array<i64: 8, 128>}]} {
    %c0 = arith.constant 0 : index
    %c0_0 = arith.constant 0 : index
    %0 = vector.load %arg1[%c0, %c0_0] : memref<8x128xbf16, #tpu.memory_space<vmem>>, vector<8x128xbf16>
    %c0_1 = arith.constant 0 : index
    %c0_2 = arith.constant 0 : index
    %1 = vector.load %arg2[%c0_1, %c0_2] : memref<128x128xbf16, #tpu.memory_space<vmem>>, vector<128x128xbf16>
    %cst = arith.constant dense<0.000000e+00> : vector<8x128xf32>
    %2 = tpu.matmul %0, %1, %cst {dimension_numbers = #tpu.dot_dimension_numbers<[1], [0], [0], [1], [0, 0, 1, 1], [], []>} : vector<8x128xbf16>, vector<128x128xbf16>, vector<8x128xf32> -> vector<8x128xf32>
    %c0_3 = arith.constant 0 : index
    %c0_4 = arith.constant 0 : index
    %3 = vector.load %arg3[%c0_3, %c0_4] : memref<1x128xf32, #tpu.memory_space<vmem>>, vector<1x128xf32>
    %4 = vector.broadcast %3 : vector<1x128xf32> to vector<8x128xf32>
    %5 = arith.addf %2, %4 : vector<8x128xf32>
    %c0_5 = arith.constant 0 : index
    %c0_6 = arith.constant 0 : index
    %6 = vector.load %arg4[%c0_5, %c0_6] : memref<8x128xf32, #tpu.memory_space<vmem>>, vector<8x128xf32>
    tpu.vector_store %arg4[%c0_5, %c0_6], %5 {strides = array<i32>} : memref<8x128xf32, #tpu.memory_space<vmem>>, vector<8x128xf32>,
    return
  }
  func.func @transform_0(%arg0: i32) -> (i32, i32) {
    %c0_i32 = arith.constant 0 : i32
    %c0_i32_0 = arith.constant 0 : i32
    %c0_i32_1 = arith.constant 0 : i32
    return %c0_i32, %c0_i32_0 : i32, i32
  }
  func.func @transform_1(%arg0: i32) -> (i32, i32) {
    %c0_i32 = arith.constant 0 : i32
    %c0_i32_0 = arith.constant 0 : i32
    return %c0_i32, %arg0 : i32, i32
  }
  func.func @transform_2(%arg0: i32) -> (i32, i32) {
    %c0_i32 = arith.constant 0 : i32
    %c0_i32_0 = arith.constant 0 : i32
    return %c0_i32, %arg0 : i32, i32
  }
  func.func @transform_3(%arg0: i32) -> (i32, i32) {
    %c0_i32 = arith.constant 0 : i32
    %c0_i32_0 = arith.constant 0 : i32
    return %c0_i32, %arg0 : i32, i32
  }
}

module attributes {stable_mosaic.version = 11 : i64} {
  func.func @_prelude_kernel(%arg0: memref<8x256xf32, #tpu.memory_space<vmem>>, %arg1: memref<8x128xf32, #tpu.memory_space<vmem>>, %arg2: memref<8x8x128xbf16, #tpu.memory_space<vmem>>, %arg3: memref<256x512xbf16, #tpu.memory_space<vmem>>, %arg4: memref<1x512xf32, #tpu.memory_space<vmem>>, %arg5: memref<128x128xbf16, #tpu.memory_space<vmem>>, %arg6: memref<128x128xbf16, #tpu.memory_space<vmem>>, %arg7: memref<1x128xf32, #tpu.memory_space<vmem>>, %arg8: memref<8x128xbf16, #tpu.memory_space<vmem>>, %arg9: memref<8x128xf32, #tpu.memory_space<vmem>>, %arg10: memref<8x128xf32, #tpu.memory_space<vmem>>) attributes {dimension_semantics = [], scalar_prefetch = 0 : i64, scratch_operands = 0 : i64, tpu.core_type = #tpu.core_type<tc>} {
    %c0 = arith.constant 0 : index
    %c0_0 = arith.constant 0 : index
    %0 = vector.load %arg0[%c0, %c0_0] : memref<8x256xf32, #tpu.memory_space<vmem>>, vector<8x256xf32>
    %1 = arith.truncf %0 : vector<8x256xf32> to vector<8x256xbf16>
    %c0_1 = arith.constant 0 : index
    %c0_2 = arith.constant 0 : index
    %2 = vector.load %arg3[%c0_1, %c0_2] : memref<256x512xbf16, #tpu.memory_space<vmem>>, vector<256x512xbf16>
    %cst = arith.constant dense<0.000000e+00> : vector<8x512xf32>
    %3 = tpu.matmul %1, %2, %cst {dimension_numbers = #tpu.dot_dimension_numbers<[1], [0], [0], [1], [0, 0, 1, 1], [], []>} : vector<8x256xbf16>, vector<256x512xbf16>, vector<8x512xf32> -> vector<8x512xf32>
    %c0_3 = arith.constant 0 : index
    %c0_4 = arith.constant 0 : index
    %4 = vector.load %arg4[%c0_3, %c0_4] : memref<1x512xf32, #tpu.memory_space<vmem>>, vector<1x512xf32>
    %5 = vector.broadcast %4 : vector<1x512xf32> to vector<8x512xf32>
    %6 = arith.addf %3, %5 : vector<8x512xf32>
    %7 = vector.extract_strided_slice %6 {offsets = [0, 0], sizes = [8, 128], strides = [1, 1]} : vector<8x512xf32> to vector<8x128xf32>
    %8 = arith.negf %7 : vector<8x128xf32>
    %9 = math.exp %8 : vector<8x128xf32>
    %cst_5 = arith.constant 1.000000e+00 : f32
    %10 = vector.broadcast %cst_5 : f32 to vector<8x128xf32>
    %11 = arith.addf %10, %9 : vector<8x128xf32>
    %12 = arith.divf %10, %11 : vector<8x128xf32>
    %13 = vector.extract_strided_slice %6 {offsets = [0, 128], sizes = [8, 128], strides = [1, 1]} : vector<8x512xf32> to vector<8x128xf32>
    %14 = arith.negf %13 : vector<8x128xf32>
    %15 = math.exp %14 : vector<8x128xf32>
    %cst_6 = arith.constant 1.000000e+00 : f32
    %16 = vector.broadcast %cst_6 : f32 to vector<8x128xf32>
    %17 = arith.addf %16, %15 : vector<8x128xf32>
    %18 = arith.divf %16, %17 : vector<8x128xf32>
    %19 = vector.extract_strided_slice %6 {offsets = [0, 256], sizes = [8, 128], strides = [1, 1]} : vector<8x512xf32> to vector<8x128xf32>
    %20 = math.tanh %19 : vector<8x128xf32>
    %21 = vector.extract_strided_slice %6 {offsets = [0, 384], sizes = [8, 128], strides = [1, 1]} : vector<8x512xf32> to vector<8x128xf32>
    %22 = arith.negf %21 : vector<8x128xf32>
    %23 = math.exp %22 : vector<8x128xf32>
    %cst_7 = arith.constant 1.000000e+00 : f32
    %24 = vector.broadcast %cst_7 : f32 to vector<8x128xf32>
    %25 = arith.addf %24, %23 : vector<8x128xf32>
    %26 = arith.divf %24, %25 : vector<8x128xf32>
    %c0_8 = arith.constant 0 : index
    %c0_9 = arith.constant 0 : index
    %27 = vector.load %arg1[%c0_8, %c0_9] : memref<8x128xf32, #tpu.memory_space<vmem>>, vector<8x128xf32>
    %28 = arith.mulf %18, %27 : vector<8x128xf32>
    %29 = arith.mulf %12, %20 : vector<8x128xf32>
    %30 = arith.addf %28, %29 : vector<8x128xf32>
    %31 = math.tanh %30 : vector<8x128xf32>
    %32 = arith.mulf %26, %31 : vector<8x128xf32>
    %c0_10 = arith.constant 0 : index
    %c0_11 = arith.constant 0 : index
    %c0_12 = arith.constant 0 : index
    %33 = vector.load %arg2[%c0_10, %c0_11, %c0_12] : memref<8x8x128xbf16, #tpu.memory_space<vmem>>, vector<8x8x128xbf16>
    %34 = vector.shape_cast %32 : vector<8x128xf32> to vector<8x1x128xf32>
    %35 = arith.truncf %34 : vector<8x1x128xf32> to vector<8x1x128xbf16>
    "tpu.trace_start"() <{level = 10 : i32, message = "bqd,bsd->bqs"}> : () -> ()
    %cst_13 = arith.constant dense<0.000000e+00> : vector<8x1x8xf32>
    %36 = tpu.matmul %35, %33, %cst_13 {dimension_numbers = #tpu.dot_dimension_numbers<[2], [2], [1], [1], [0, 0, 0, 1, 1, 1], [0], [0]>} : vector<8x1x128xbf16>, vector<8x8x128xbf16>, vector<8x1x8xf32> -> vector<8x1x8xf32>
    "tpu.trace_stop"() : () -> ()
    %37 = vector.shape_cast %36 : vector<8x1x8xf32> to vector<8x8xf32>
    %cst_14 = arith.constant dense<0xFF800000> : vector<8xf32>
    %38 = vector.multi_reduction <maximumf>, %37, %cst_14 [1] : vector<8x8xf32> to vector<8xf32>
    %39 = vector.shape_cast %38 : vector<8xf32> to vector<8x1xf32>
    %40 = vector.broadcast %39 : vector<8x1xf32> to vector<8x8xf32>
    %41 = arith.subf %37, %40 : vector<8x8xf32>
    %42 = math.exp %41 : vector<8x8xf32>
    %cst_15 = arith.constant dense<0.000000e+00> : vector<8xf32>
    %43 = vector.multi_reduction <add>, %42, %cst_15 [1] : vector<8x8xf32> to vector<8xf32>
    %44 = vector.shape_cast %43 : vector<8xf32> to vector<8x1xf32>
    %45 = vector.broadcast %44 : vector<8x1xf32> to vector<8x8xf32>
    %46 = arith.divf %42, %45 : vector<8x8xf32>
    %47 = vector.shape_cast %46 : vector<8x8xf32> to vector<8x1x8xf32>
    %48 = arith.truncf %47 : vector<8x1x8xf32> to vector<8x1x8xbf16>
    "tpu.trace_start"() <{level = 10 : i32, message = "bqs,bsd->bqd"}> : () -> ()
    %cst_16 = arith.constant dense<0.000000e+00> : vector<8x1x128xf32>
    %49 = tpu.matmul %48, %33, %cst_16 {dimension_numbers = #tpu.dot_dimension_numbers<[2], [1], [1], [2], [0, 0, 0, 1, 1, 2], [0], [0]>} : vector<8x1x8xbf16>, vector<8x8x128xbf16>, vector<8x1x128xf32> -> vector<8x1x128xf32>
    "tpu.trace_stop"() : () -> ()
    %50 = vector.shape_cast %49 : vector<8x1x128xf32> to vector<8x128xf32>
    %51 = arith.truncf %50 : vector<8x128xf32> to vector<8x128xbf16>
    %c0_17 = arith.constant 0 : index
    %c0_18 = arith.constant 0 : index
    %52 = vector.load %arg5[%c0_17, %c0_18] : memref<128x128xbf16, #tpu.memory_space<vmem>>, vector<128x128xbf16>
    %cst_19 = arith.constant dense<0.000000e+00> : vector<8x128xf32>
    %53 = tpu.matmul %51, %52, %cst_19 {dimension_numbers = #tpu.dot_dimension_numbers<[1], [0], [0], [1], [0, 0, 1, 1], [], []>} : vector<8x128xbf16>, vector<128x128xbf16>, vector<8x128xf32> -> vector<8x128xf32>
    %54 = arith.truncf %32 : vector<8x128xf32> to vector<8x128xbf16>
    %c0_20 = arith.constant 0 : index
    %c0_21 = arith.constant 0 : index
    %55 = vector.load %arg6[%c0_20, %c0_21] : memref<128x128xbf16, #tpu.memory_space<vmem>>, vector<128x128xbf16>
    %cst_22 = arith.constant dense<0.000000e+00> : vector<8x128xf32>
    %56 = tpu.matmul %54, %55, %cst_22 {dimension_numbers = #tpu.dot_dimension_numbers<[1], [0], [0], [1], [0, 0, 1, 1], [], []>} : vector<8x128xbf16>, vector<128x128xbf16>, vector<8x128xf32> -> vector<8x128xf32>
    %57 = arith.addf %53, %56 : vector<8x128xf32>
    %c0_23 = arith.constant 0 : index
    %c0_24 = arith.constant 0 : index
    %58 = vector.load %arg7[%c0_23, %c0_24] : memref<1x128xf32, #tpu.memory_space<vmem>>, vector<1x128xf32>
    %59 = vector.broadcast %58 : vector<1x128xf32> to vector<8x128xf32>
    %60 = arith.addf %57, %59 : vector<8x128xf32>
    %61 = arith.truncf %60 : vector<8x128xf32> to vector<8x128xbf16>
    %c0_25 = arith.constant 0 : index
    %c0_26 = arith.constant 0 : index
    %62 = vector.load %arg8[%c0_25, %c0_26] : memref<8x128xbf16, #tpu.memory_space<vmem>>, vector<8x128xbf16>
    tpu.vector_store %arg8[%c0_25, %c0_26], %61 {strides = array<i32>} : memref<8x128xbf16, #tpu.memory_space<vmem>>, vector<8x128xbf16>,
    %c0_27 = arith.constant 0 : index
    %c0_28 = arith.constant 0 : index
    %63 = vector.load %arg9[%c0_27, %c0_28] : memref<8x128xf32, #tpu.memory_space<vmem>>, vector<8x128xf32>
    tpu.vector_store %arg9[%c0_27, %c0_28], %32 {strides = array<i32>} : memref<8x128xf32, #tpu.memory_space<vmem>>, vector<8x128xf32>,
    %c0_29 = arith.constant 0 : index
    %c0_30 = arith.constant 0 : index
    %64 = vector.load %arg10[%c0_29, %c0_30] : memref<8x128xf32, #tpu.memory_space<vmem>>, vector<8x128xf32>
    tpu.vector_store %arg10[%c0_29, %c0_30], %30 {strides = array<i32>} : memref<8x128xf32, #tpu.memory_space<vmem>>, vector<8x128xf32>,
    return
  }
}

</mosaic_0001>

<bundles_post_ra>
// kernel: decoder_step.3
= control target key start
LH: loop header
LB: loop body
LE: loop exit
PB: predicated region body
PF: predicated region fallthrough
CT: control target
= control target key end

     0   :  { %v180_v0 = vmov 0.0   ;;  %vm181_vm0 = vmmov 0   ;;  %s235_s1 = inlined_call_operand.vmem [shape: bf16[128,128], index: 1, kind: input, shape index: {}]   ;;  %s236_s0 = inlined_call_operand.vmem [shape: bf16[8,128], index: 0, kind: input, shape index: {}]   ;;  %s237_s2 = inlined_call_operand.vmem [shape: f32[1,128], index: 2, kind: input, shape index: {}]   ;;  %s238_s3 = inlined_call_operand.vmem [shape: f32[8,128], index: 3, kind: output, shape index: {}]  }
   0x1   :  { %150 = vmatprep.subr.bf16.mxu0 %v180_v0  ;;  %v172_v1 = vld [vmem:[%s235_s1] sm:$0xff]   ;;  %166 = vmatprep.mubr.msk.bf16.mxu0 %vm181_vm0, %v180_v0  ;;  %v173_v2 = vld [vmem:[%s235_s1 + $0x8] sm:$0xff]   ;;  %v174_v3 = vld [vmem:[%s235_s1 + $0x10] sm:$0xff]  }
   0x2   :  { %151 = vmatpush3.bf16.msra.mxu0 %v172_v1  ;;  %v175_v4 = vld [vmem:[%s235_s1 + $0x18] sm:$0xff]   ;;  %v176_v5 = vld [vmem:[%s235_s1 + $0x20] sm:$0xff]   ;;  %v177_v6 = vld [vmem:[%s235_s1 + $0x28] sm:$0xff]  }
   0x3   :  { %152 = vmatprep.subr.bf16.mxu0 %v180_v0  ;;  %v178_v7 = vld [vmem:[%s235_s1 + $0x30] sm:$0xff]   ;;  %v179_v8 = vld [vmem:[%s235_s1 + $0x38] sm:$0xff]   ;;  %v15_v9 = vld [vmem:[%s236_s0] sm:$0xf] }
   0x4   :  { %v132_v10 = vld [vmem:[%s237_s2] ss:$0 sm:$0xff] }
   0x6   :  { %153 = vmatpush3.bf16.msra.mxu0 %v173_v2 }
   0x7   :  { %154 = vmatprep.subr.bf16.mxu0 %v180_v0 }
   0xa   :  { %155 = vmatpush3.bf16.msra.mxu0 %v174_v3 }
   0xb   :  { %156 = vmatprep.subr.bf16.mxu0 %v180_v0 }
   0xe   :  { %157 = vmatpush3.bf16.msra.mxu0 %v175_v4 }
   0xf   :  { %158 = vmatprep.subr.bf16.mxu0 %v180_v0 }
  0x12   :  { %159 = vmatpush3.bf16.msra.mxu0 %v176_v5 }
  0x13   :  { %160 = vmatprep.subr.bf16.mxu0 %v180_v0 }
  0x16   :  { %161 = vmatpush3.bf16.msra.mxu0 %v177_v6 }
  0x17   :  { %162 = vmatprep.subr.bf16.mxu0 %v180_v0 }
  0x1a   :  { %163 = vmatpush3.bf16.msra.mxu0 %v178_v7 }
  0x1b   :  { %164 = vmatprep.subr.bf16.mxu0 %v180_v0 }
  0x1e   :  { %165 = vmatpush3.bf16.msra.mxu0 %v179_v8 }
  0x21   :  { %167 = vmatmul.mubr.bf16.vlgmr.msra.gmra.mrb[0].mxu0 %v15_v9 }
  0xf4   :  { %v121_v11 = vpop.f32.mrb[0].mxu0 }
  0xf5   :  { %v122_v12 = vadd.f32 %v132_v10, %v121_v11  ;;  %v168_v13 = vpop.f32.mrb[1].mxu0 }
  0xf6   :  { %v124_v14 = vpop.f32.mrb[2].mxu0 }
  0xf7   :  { %127 = vst [vmem:[%s238_s3] sm:$0xff] %v122_v12  ;;  %v169_v15 = vpop.f32.mrb[3].mxu0 }

// kernel: decoder_step.2
= control target key start
LH: loop header
LB: loop body
LE: loop exit
PB: predicated region body
PF: predicated region fallthrough
CT: control target
= control target key end

     0   :  { %16 = vsyncpa [#allocation3], 0  ;;  %s2578_s0 = inlined_call_operand.vmem [shape: f32[8,256], index: 0, kind: input, shape index: {}]   ;;  %s2579_s1 = inlined_call_operand.vmem [shape: f32[8,128], index: 1, kind: input, shape index: {}]   ;;  %s2580_s2 = inlined_call_operand.vmem [shape: bf16[8,8,128], index: 2, kind: input, shape index: {}]   ;;  %s2581_s3 = inlined_call_operand.hbm [shape: bf16[256,512], index: 3, kind: input, shape index: {}]   ;;  %s2582_s4 = inlined_call_operand.vmem [shape: f32[1,512], index: 4, kind: input, shape index: {}]   ;;  %s2583_s5 = inlined_call_operand.vmem [shape: bf16[128,128], index: 5, kind: input, shape index: {}]   ;;  %s2584_s6 = inlined_call_operand.hbm [shape: bf16[128,128], index: 6, kind: input, shape index: {}]   ;;  %s2585_s7 = inlined_call_operand.vmem [shape: f32[1,128], index: 7, kind: input, shape index: {}]   ;;  %s2586_s8 = inlined_call_operand.vmem [shape: bf16[8,128], index: 8, kind: output, shape index: {0}]   ;;  %s2587_s9 = inlined_call_operand.vmem [shape: f32[8,128], index: 9, kind: output, shape index: {1}]   ;;  %s2588_s10 = inlined_call_operand.vmem [shape: f32[8,128], index: 10, kind: output, shape index: {2}]  }
   0x1   :  { %17 = vsyncpa [#allocation5], 0  ;;  %s2251_s13 = smov [#allocation2]   ;;  %s2203_s17 = scalar_lea.hbm %s2581_s3, 8192 }
   0x2   :  { %s29_s14 = sshll.u32 %s2251_s13, 4  ;;  %p2204_p0 = scmp.ne.s32.totalorder %s2581_s3, %s2203_s17  ;;  %s30_s14 = int_to_ptr.vmem [resolvable:$true] %s29_s14 }
   0x3   :  { %p2207_p1 = scmp.lt.u32.totalorder %s2203_s17, %s2581_s3 }
   0x5   :  { %p2209_p2 = pnand %p2207_p1, %p2204_p0 }
   0x7   :  { %2212 = shalt.err (!%p2209_p2)
}
   0x8   :  { %s2213_s22 = scalar_lea.vmem %s30_s14, 8192  ;;  %p2218_p4 = scmp.lt.s32.totalorder %s30_s14, %s30_s14 }
   0x9   :  { %p2214_p3 = scmp.ne.s32.totalorder %s30_s14, %s2213_s22  ;;  %p2219_p5 = scmp.lt.s32.totalorder %s2213_s22, %s2213_s22 }
   0xb   :  { %p2220_p6 = por %p2219_p5, %p2218_p4 }
   0xd   :  { %p2221_p7 = pnand %p2220_p6, %p2214_p3 }
   0xf   :  { %2224 = shalt.err (!%p2221_p7)
}
  0x10   :  { %s2252_s23 = smov 256   ;;  %s2253_s24 = smov 16  }
  0x11   :  { %35 = dma.hbm_to_vmem [thread:$0]  %s2581_s3, 8192, %s30_s14, [#allocation3], %s2252_s23, %s2252_s23, %s2253_s24  }
  0x12   :  { %s2254_s27 = smov [#allocation4]   ;;  %s2225_s11 = scalar_lea.hbm %s2584_s6, 1024 }
  0x13   :  { %s45_s28 = sshll.u32 %s2254_s27, 4  ;;  %p2226_p8 = scmp.ne.s32.totalorder %s2584_s6, %s2225_s11  ;;  %s46_s28 = int_to_ptr.vmem [resolvable:$true] %s45_s28 }
  0x14   :  { %p2229_p9 = scmp.lt.u32.totalorder %s2225_s11, %s2584_s6 }
  0x16   :  { %p2231_p10 = pnand %p2229_p9, %p2226_p8 }
  0x18   :  { %2234 = shalt.err (!%p2231_p10)
}
  0x19   :  { %s2235_s17 = scalar_lea.vmem %s46_s28, 1024  ;;  %p2240_p12 = scmp.lt.s32.totalorder %s46_s28, %s46_s28 }
  0x1a   :  { %p2236_p11 = scmp.ne.s32.totalorder %s46_s28, %s2235_s17  ;;  %p2241_p13 = scmp.lt.s32.totalorder %s2235_s17, %s2235_s17 }
  0x1c   :  { %p2242_p0 = por %p2241_p13, %p2240_p12 }
  0x1e   :  { %p2243_p1 = pnand %p2242_p0, %p2236_p11 }
  0x20   :  { %2246 = shalt.err (!%p2243_p1)
}
  0x21   :  { %s2255_s3 = smov 64   ;;  %s2256_s14 = smov 4  }
  0x22   :  { %51 = dma.hbm_to_vmem [thread:$0]  %s2584_s6, 1024, %s46_s28, [#allocation5], %s2255_s3, %s2255_s3, %s2256_s14  }
  0x23   :  { %2247 = dma.done.wait [#allocation3], 8192  }
  0x24   :  { %2248 = vsyncadd [#allocation3], 4294959104 }
  0x25   :  { %2249 = dma.done.wait [#allocation5], 1024  }
  0x26   :  { %2250 = vsyncadd [#allocation5], 4294966272  ;;  %v2043_v0 = vld [vmem:[#allocation2 + $0x4] ss:$16 sps:$4 sm:$0xff]   ;;  %v2045_v1 = vld [vmem:[#allocation2] ss:$16 sps:$4 sm:$0xff]  }
  0x27   :  { %471 = vmatprep.subr.bf16.mxu0 %v2043_v0  ;;  %v2046_v2 = vld [vmem:[#allocation2 + $0x24] ss:$16 sps:$4 sm:$0xff]   ;;  %v2048_v3 = vld [vmem:[#allocation2 + $0x20] ss:$16 sps:$4 sm:$0xff]   ;;  %v2054_v5 = vld [vmem:[#allocation2 + $0xc] ss:$16 sps:$4 sm:$0xff]  }
  0x28   :  { %472 = vmatpush1.bf16.msra.mxu0 %v2045_v1  ;;  %v2049_v4 = vld [vmem:[#allocation2 + $0x44] ss:$16 sps:$4 sm:$0xff]   ;;  %v2057_v6 = vld [vmem:[#allocation2 + $0x8] ss:$16 sps:$4 sm:$0xff]   ;;  %v2051_v7 = vld [vmem:[#allocation2 + $0x40] ss:$16 sps:$4 sm:$0xff]   ;;  %512 = vmatprep.subr.bf16.mxu1 %v2054_v5 }
  0x29   :  { %473 = vmatprep.subr.bf16.mxu0 %v2046_v2  ;;  %v2052_v8 = vld [vmem:[#allocation2 + $0x64] ss:$16 sps:$4 sm:$0xff]   ;;  %513 = vmatpush1.bf16.msra.mxu1 %v2057_v6  ;;  %v2060_v9 = vld [vmem:[#allocation2 + $0x2c] ss:$16 sps:$4 sm:$0xff]   ;;  %v2063_v10 = vld [vmem:[#allocation2 + $0x28] ss:$16 sps:$4 sm:$0xff]  }
  0x2a   :  { %514 = vmatprep.subr.bf16.mxu1 %v2060_v9  ;;  %v2056_v11 = vld [vmem:[#allocation2 + $0x60] ss:$16 sps:$4 sm:$0xff]   ;;  %v2058_v12 = vld [vmem:[#allocation2 + $0x84] ss:$16 sps:$4 sm:$0xff]   ;;  %v2066_v13 = vld [vmem:[#allocation2 + $0x4c] ss:$16 sps:$4 sm:$0xff]  }
  0x2b   :  { %v2069_v14 = vld [vmem:[#allocation2 + $0x48] ss:$16 sps:$4 sm:$0xff]   ;;  %v2072_v15 = vld [vmem:[#allocation2 + $0x6c] ss:$16 sps:$4 sm:$0xff]   ;;  %v2062_v16 = vld [vmem:[#allocation2 + $0x80] ss:$16 sps:$4 sm:$0xff]  }
  0x2c   :  { %474 = vmatpush1.bf16.msra.mxu0 %v2048_v3  ;;  %v2064_v17 = vld [vmem:[#allocation2 + $0xa4] ss:$16 sps:$4 sm:$0xff]   ;;  %v2075_v18 = vld [vmem:[#allocation2 + $0x68] ss:$16 sps:$4 sm:$0xff]   ;;  %v2078_v19 = vld [vmem:[#allocation2 + $0x8c] ss:$16 sps:$4 sm:$0xff]  }
  0x2d   :  { %475 = vmatprep.subr.bf16.mxu0 %v2049_v4  ;;  %515 = vmatpush1.bf16.msra.mxu1 %v2063_v10  ;;  %v2068_v20 = vld [vmem:[#allocation2 + $0xa0] ss:$16 sps:$4 sm:$0xff]   ;;  %v2070_v21 = vld [vmem:[#allocation2 + $0xc4] ss:$16 sps:$4 sm:$0xff]   ;;  %v2081_v22 = vld [vmem:[#allocation2 + $0x88] ss:$16 sps:$4 sm:$0xff]  }
  0x2e   :  { %516 = vmatprep.subr.bf16.mxu1 %v2066_v13  ;;  %v2084_v23 = vld [vmem:[#allocation2 + $0xac] ss:$16 sps:$4 sm:$0xff]   ;;  %v2074_v24 = vld [vmem:[#allocation2 + $0xc0] ss:$16 sps:$4 sm:$0xff]   ;;  %v2076_v25 = vld [vmem:[#allocation2 + $0xe4] ss:$16 sps:$4 sm:$0xff]  }
  0x2f   :  { %v2087_v26 = vld [vmem:[#allocation2 + $0xa8] ss:$16 sps:$4 sm:$0xff]   ;;  %v2090_v27 = vld [vmem:[#allocation2 + $0xcc] ss:$16 sps:$4 sm:$0xff]   ;;  %v2080_v28 = vld [vmem:[#allocation2 + $0xe0] ss:$16 sps:$4 sm:$0xff]  }
  0x30   :  { %476 = vmatpush1.bf16.msra.mxu0 %v2051_v7  ;;  %v2082_v29 = vld [vmem:[#allocation2 + $0x104] ss:$16 sps:$4 sm:$0xff]   ;;  %v2093_v30 = vld [vmem:[#allocation2 + $0xc8] ss:$16 sps:$4 sm:$0xff]   ;;  %v2096_v31 = vld [vmem:[#allocation2 + $0xec] ss:$16 sps:$4 sm:$0xff]   ;;  %v131_v7 = vlaneseq }
  0x31   :  { %477 = vmatprep.subr.bf16.mxu0 %v2052_v8  ;;  %517 = vmatpush1.bf16.msra.mxu1 %v2069_v14  ;;  %v2086_v32 = vld [vmem:[#allocation2 + $0x100] ss:$16 sps:$4 sm:$0xff]   ;;  %v2088_v33 = vld [vmem:[#allocation2 + $0x124] ss:$16 sps:$4 sm:$0xff]   ;;  %v2099_v34 = vld [vmem:[#allocation2 + $0xe8] ss:$16 sps:$4 sm:$0xff]  }
  0x32   :  { %518 = vmatprep.subr.bf16.mxu1 %v2072_v15  ;;  %v2102_v35 = vld [vmem:[#allocation2 + $0x10c] ss:$16 sps:$4 sm:$0xff]   ;;  %v2092_v36 = vld [vmem:[#allocation2 + $0x120] ss:$16 sps:$4 sm:$0xff]   ;;  %v2094_v37 = vld [vmem:[#allocation2 + $0x144] ss:$16 sps:$4 sm:$0xff]  }
  0x33   :  { %v2105_v38 = vld [vmem:[#allocation2 + $0x108] ss:$16 sps:$4 sm:$0xff]   ;;  %v2108_v39 = vld [vmem:[#allocation2 + $0x12c] ss:$16 sps:$4 sm:$0xff]   ;;  %v2098_v41 = vld [vmem:[#allocation2 + $0x140] ss:$16 sps:$4 sm:$0xff]  }
  0x34   :  { %478 = vmatpush1.bf16.msra.mxu0 %v2056_v11  ;;  %v62_v40 = vld [vmem:[%s2578_s0 + $0x8] sm:$0xff]  ;;  %v2100_v43 = vld [vmem:[#allocation2 + $0x164] ss:$16 sps:$4 sm:$0xff]   ;;  %v2104_v45 = vld [vmem:[#allocation2 + $0x160] ss:$16 sps:$4 sm:$0xff]   ;;  %v2257_v4 = vmov 0.0  }
  0x35   :  { %479 = vmatprep.subr.bf16.mxu0 %v2058_v12  ;;  %519 = vmatpush1.bf16.msra.mxu1 %v2075_v18  ;;  %v64_v42 = vpack.c.bf16 %v62_v40, %v62_v40  ;;  %v2111_v44 = vld [vmem:[#allocation2 + $0x128] ss:$16 sps:$4 sm:$0xff]   ;;  %v2114_v46 = vld [vmem:[#allocation2 + $0x14c] ss:$16 sps:$4 sm:$0xff]   ;;  %v2106_v47 = vld [vmem:[#allocation2 + $0x184] ss:$16 sps:$4 sm:$0xff]  }
  0x36   :  { %520 = vmatprep.subr.bf16.mxu1 %v2078_v19  ;;  %v2117_v48 = vld [vmem:[#allocation2 + $0x148] ss:$16 sps:$4 sm:$0xff]   ;;  %v2120_v49 = vld [vmem:[#allocation2 + $0x16c] ss:$16 sps:$4 sm:$0xff]   ;;  %v2110_v50 = vld [vmem:[#allocation2 + $0x180] ss:$16 sps:$4 sm:$0xff]  }
  0x37   :  { %503 = vmatprep.mubr.bf16.mxu0 %v64_v42  ;;  %544 = vmatprep.mubr.bf16.mxu1 %v64_v42  ;;  %v2112_v51 = vld [vmem:[#allocation2 + $0x1a4] ss:$16 sps:$4 sm:$0xff]   ;;  %v2123_v52 = vld [vmem:[#allocation2 + $0x168] ss:$16 sps:$4 sm:$0xff]   ;;  %v2126_v53 = vld [vmem:[#allocation2 + $0x18c] ss:$16 sps:$4 sm:$0xff]  }
  0x38   :  { %480 = vmatpush1.bf16.msra.mxu0 %v2062_v16  ;;  %v2116_v54 = vld [vmem:[#allocation2 + $0x1a0] ss:$16 sps:$4 sm:$0xff]   ;;  %v2118_v55 = vld [vmem:[#allocation2 + $0x1c4] ss:$16 sps:$4 sm:$0xff]   ;;  %v2129_v56 = vld [vmem:[#allocation2 + $0x188] ss:$16 sps:$4 sm:$0xff]  }
  0x39   :  { %481 = vmatprep.subr.bf16.mxu0 %v2064_v17  ;;  %521 = vmatpush1.bf16.msra.mxu1 %v2081_v22  ;;  %v2130_v57 = vld [vmem:[#allocation2 + $0x1ac] ss:$16 sps:$4 sm:$0xff]   ;;  %v2122_v58 = vld [vmem:[#allocation2 + $0x1c0] ss:$16 sps:$4 sm:$0xff]   ;;  %v2124_v59 = vld [vmem:[#allocation2 + $0x1e4] ss:$16 sps:$4 sm:$0xff]  }
  0x3a   :  { %522 = vmatprep.subr.bf16.mxu1 %v2084_v23  ;;  %v2132_v60 = vld [vmem:[#allocation2 + $0x1a8] ss:$16 sps:$4 sm:$0xff]   ;;  %v2133_v61 = vld [vmem:[#allocation2 + $0x1cc] ss:$16 sps:$4 sm:$0xff]   ;;  %v2128_v62 = vld [vmem:[#allocation2 + $0x1e0] ss:$16 sps:$4 sm:$0xff]  }
  0x3b   :  { %v61_v63 = vld [vmem:[%s2578_s0] sm:$0xff]  ;;  %v2135_v0 = vld [vmem:[#allocation2 + $0x1c8] ss:$16 sps:$4 sm:$0xff]   ;;  %v2136_v1 = vld [vmem:[#allocation2 + $0x1ec] ss:$16 sps:$4 sm:$0xff]   ;;  %vm2258_vm0 = vmmov 0  }
  0x3c   :  { %482 = vmatpush1.bf16.msra.mxu0 %v2068_v20  ;;  %v63_v2 = vpack.c.bf16 %v61_v63, %v61_v63  ;;  %v2138_v3 = vld [vmem:[#allocation2 + $0x1e8] ss:$16 sps:$4 sm:$0xff]   ;;  %v2349_v5 = vld [vmem:[%s2580_s2] sm:$0xf]  ;;  %v2356_v6 = vld [vmem:[%s2580_s2 + $0x4] sm:$0xf] }
  0x3d   :  { %483 = vmatprep.subr.bf16.mxu0 %v2070_v21  ;;  %523 = vmatpush1.bf16.msra.mxu1 %v2087_v26  ;;  %v132_v8 = vshrl.u32 %v131_v7, 7  ;;  %v129_v10 = vld [vmem:[%s2582_s4] sm:$0xf]  ;;  %v2409_v7 = vld [vmem:[%s2580_s2 + $0x14] sm:$0xf]  ;;  %vm981_vm1 = vcmask 1041409  }
  0x3e   :  { %524 = vmatprep.subr.bf16.mxu1 %v2090_v27  ;;  %vm984_vm2 = vcmask 1042434   ;;  %vm987_vm3 = vcmask 1043459   ;;  %vm990_vm4 = vcmask 1044484   ;;  %vm993_vm5 = vcmask 1045509  }
  0x3f   :  { %v133_v9 = vsub.s32 0, %v132_v8  ;;  %v137_v11 = vsub.s32 1, %v132_v8  ;;  %v145_v14 = vsub.s32 3, %v132_v8  ;;  %vm996_vm6 = vcmask 1046534  }
  0x40   :  { %484 = vmatpush1.bf16.msra.mxu0 %v2074_v24  ;;  %v141_v24 = vsub.s32 2, %v132_v8  ;;  %vm999_vm7 = vcmask 1047559   ;;  %vm1002_vm8 = vcmask 64512   ;;  %vm1115_vm9 = vcmask 1043456  }
  0x41   :  { %485 = vmatprep.subr.bf16.mxu0 %v2076_v25  ;;  %525 = vmatpush1.bf16.msra.mxu1 %v2093_v30  ;;  %v134_v12 = vrot.slane %v129_v10, %v133_v9  ;;  %v138_v13 = vrot.slane %v129_v10, %v137_v11  ;;  %v146_v22 = vrot.slane %v129_v10, %v145_v14  ;;  %v2427_v14 = vld [vmem:[%s2580_s2 + $0x1c] sm:$0xf] }
  0x42   :  { %526 = vmatprep.subr.bf16.mxu1 %v2096_v31 }
  0x44   :  { %486 = vmatpush1.bf16.msra.mxu0 %v2080_v28 }
  0x45   :  { %487 = vmatprep.subr.bf16.mxu0 %v2082_v29  ;;  %527 = vmatpush1.bf16.msra.mxu1 %v2099_v34  ;;  %v142_v29 = vrot.slane %v129_v10, %v141_v24 }
  0x46   :  { %528 = vmatprep.subr.bf16.mxu1 %v2102_v35 }
  0x48   :  { %488 = vmatpush1.bf16.msra.mxu0 %v2086_v32 }
  0x49   :  { %489 = vmatprep.subr.bf16.mxu0 %v2088_v33  ;;  %529 = vmatpush1.bf16.msra.mxu1 %v2105_v38 }
  0x4a   :  { %530 = vmatprep.subr.bf16.mxu1 %v2108_v39  ;;  %v572_v39 = vld [vmem:[%s2579_s1] sm:$0xff] }
  0x4c   :  { %490 = vmatpush1.bf16.msra.mxu0 %v2092_v36 }
  0x4d   :  { %491 = vmatprep.subr.bf16.mxu0 %v2094_v37  ;;  %531 = vmatpush1.bf16.msra.mxu1 %v2111_v44 }
  0x4e   :  { %532 = vmatprep.subr.bf16.mxu1 %v2114_v46  ;;  %v2259_v46 = vmov 1966171168  }
  0x50   :  { %492 = vmatpush1.bf16.msra.mxu0 %v2098_v41 }
  0x51   :  { %493 = vmatprep.subr.bf16.mxu0 %v2100_v43  ;;  %533 = vmatpush1.bf16.msra.mxu1 %v2117_v48 }
  0x52   :  { %534 = vmatprep.subr.bf16.mxu1 %v2120_v49 }
  0x54   :  { %494 = vmatpush1.bf16.msra.mxu0 %v2104_v45 }
  0x55   :  { %495 = vmatprep.subr.bf16.mxu0 %v2106_v47  ;;  %535 = vmatpush1.bf16.msra.mxu1 %v2123_v52  ;;  %v589_v47 = vunpack.c.l.s4 %v2259_v46 }
  0x56   :  { %536 = vmatprep.subr.bf16.mxu1 %v2126_v53 }
  0x57   :  { %v590_v48 = vunpack.c.0.s8 %v589_v47 }
  0x58   :  { %496 = vmatpush1.bf16.msra.mxu0 %v2110_v50 }
  0x59   :  { %497 = vmatprep.subr.bf16.mxu0 %v2112_v51  ;;  %537 = vmatpush1.bf16.msra.mxu1 %v2129_v56  ;;  %v593_v50 = vsub.s32 %v590_v48, %v132_v8 }
  0x5a   :  { %538 = vmatprep.subr.bf16.mxu1 %v2130_v57  ;;  %v2384_v57 = vld [vmem:[%s2580_s2 + $0x8] sm:$0xf] }
  0x5c   :  { %498 = vmatpush1.bf16.msra.mxu0 %v2116_v54 }
  0x5d   :  { %499 = vmatprep.subr.bf16.mxu0 %v2118_v55  ;;  %539 = vmatpush1.bf16.msra.mxu1 %v2132_v60  ;;  %v2389_v60 = vld [vmem:[%s2580_s2 + $0xc] sm:$0xf] }
  0x5e   :  { %540 = vmatprep.subr.bf16.mxu1 %v2133_v61 }
  0x60   :  { %500 = vmatpush1.bf16.msra.mxu0 %v2122_v58 }
  0x61   :  { %501 = vmatprep.subr.bf16.mxu0 %v2124_v59  ;;  %541 = vmatpush1.bf16.msra.mxu1 %v2135_v0 }
  0x62   :  { %542 = vmatprep.subr.bf16.mxu1 %v2136_v1 }
  0x64   :  { %502 = vmatpush1.bf16.msra.mxu0 %v2128_v62 }
  0x65   :  { %543 = vmatpush1.bf16.msra.mxu1 %v2138_v3  ;;  %1898 = vmatprep.subr.bf16.mxu0 %v2257_v4 }
  0x66   :  { %1904 = vmatprep.subr.bf16.mxu1 %v2257_v4 }
  0x67   :  { %504 = vmatmul.mubr.bf16.vlgmr.msra.gmra.mrb[0].mxu0 %v63_v2 }
  0x68   :  { %545 = vmatmul.mubr.bf16.vlgmr.msra.gmra.mrb[0].mxu1 %v63_v2  ;;  %1900 = vmatprep.mubr.msk.bf16.mxu0 %vm2258_vm0, %v2257_v4  ;;  %v2404_v2 = vld [vmem:[%s2580_s2 + $0x10] sm:$0xf] }
  0x69   :  { %1906 = vmatprep.mubr.msk.bf16.mxu1 %vm2258_vm0, %v2257_v4 }
  0x6d   :  { %1899 = vmatpush3.bf16.xpose.msra.mxu0 %v2349_v5 }
  0x6e   :  { %1910 = vmatprep.subr.bf16.mxu0 %v2257_v4  ;;  %1905 = vmatpush3.bf16.xpose.msra.mxu1 %v2356_v6 }
  0x6f   :  { %1916 = vmatprep.subr.bf16.mxu1 %v2257_v4 }
 0x13a   :  { %v505_v15 = vpop.f32.mrb[0].mxu0 }
 0x13b   :  { %v506_v16 = vadd.f32 %v505_v15, %v134_v12  ;;  %v507_v17 = vpop.f32.mrb[1].mxu0  ;;  %v546_v25 = vpop.f32.mrb[0].mxu1  ;;  %v2422_v12 = vld [vmem:[%s2580_s2 + $0x18] sm:$0xf] }
 0x13c   :  { %v508_v18 = vadd.f32 %v507_v17, %v138_v13  ;;  %v509_v19 = vpop.f32.mrb[2].mxu0  ;;  %v548_v26 = vpop.f32.mrb[1].mxu1  ;;  %v547_v32 = vadd.f32 %v546_v25, %v142_v29 }
 0x13d   :  { %v1820_v20 = vmul.f32 -1.442695, %v506_v16  ;;  %v510_v21 = vpop.f32.mrb[3].mxu0  ;;  %v549_v27 = vadd.f32 %v548_v26, %v146_v22  ;;  %v550_v28 = vpop.f32.mrb[2].mxu1 }
 0x13e   :  { %v1821_v23 = vmul.f32 -1.442695, %v508_v18  ;;  %v551_v30 = vpop.f32.mrb[3].mxu1 }
 0x13f   :  { %2155 = vpow2.f32 %v1820_v20  ;;  %v1822_v31 = vmul.f32 -1.442695, %v549_v27 }
 0x140   :  { %2157 = vpow2.f32 %v1821_v23 }
 0x141   :  { %2159 = vpow2.f32 %v1822_v31 }
 0x142   :  { %2161 = vtanh.f32 %v547_v32 }
 0x149   :  { %v2156_v33 = vpop.eup %2155 }
 0x14a   :  { %v2158_v34 = vpop.eup %2157  ;;  %v556_v35 = vadd.f32 1.0, %v2156_v33 }
 0x14b   :  { %v562_v36 = vadd.f32 1.0, %v2158_v34  ;;  %v2160_v37 = vpop.eup %2159 }
 0x14c   :  { %2163 = vrcp.f32 %v556_v35  ;;  %v2162_v38 = vpop.eup %2161  ;;  %v569_v41 = vadd.f32 1.0, %v2160_v37 }
 0x14d   :  { %2165 = vrcp.f32 %v562_v36 }
 0x14e   :  { %2167 = vrcp.f32 %v569_v41 }
 0x156   :  { %v2164_v40 = vpop.eup %2163 }
 0x157   :  { %v2166_v42 = vpop.eup %2165  ;;  %v574_v43 = vmul.f32 %v2164_v40, %v2162_v38 }
 0x158   :  { %v573_v44 = vmul.f32 %v2166_v42, %v572_v39  ;;  %v2168_v49 = vpop.eup %2167 }
 0x15a   :  { %v575_v45 = vadd.f32 %v574_v43, %v573_v44 }
 0x15c   :  { %2169 = vtanh.f32 %v575_v45  ;;  %1741 = vst [vmem:[%s2588_s10] sm:$0xff] %v575_v45 }
 0x166   :  { %v2170_v51 = vpop.eup %2169 }
 0x167   :  { %v2374_v52 = vmul.f32 %v2170_v51, %v2168_v49 }
 0x169   :  { %1740 = vst [vmem:[%s2587_s9] sm:$0xff] %v2374_v52  ;;  %v594_v53 = vrot.slane %v2374_v52, %v593_v50  ;;  %v587_v61 = vcombine.high %v2374_v52, %v2374_v52 }
 0x16b   :  { %v610_v54 = vrot.slane %v594_v53, %v593_v50  ;;  %v602_v55 = vcombine.high %v594_v53, %v594_v53  ;;  %v601_v0 = vrot.slane %v587_v61, %v593_v50 }
 0x16d   :  { %v644_v56 = vpack.c.bf16 %v610_v54, %v610_v54  ;;  %v624_v58 = vrot.slane %v602_v55, %v593_v50  ;;  %v632_v62 = vcombine.high %v610_v54, %v610_v54  ;;  %v603_v8 = vcombine.high %v601_v0, %v601_v0 }
 0x16e   :  { %v617_v9 = vrot.slane %v601_v0, %v593_v50 }
 0x16f   :  { %1901 = vmatmul.mubr.bf16.vlgmr.msra.gmra.mrb[4].mxu0 %v644_v56  ;;  %v645_v59 = vpack.c.bf16 %v624_v58, %v624_v58  ;;  %v634_v63 = vcombine.high %v624_v58, %v624_v58  ;;  %v646_v1 = vpack.c.bf16 %v632_v62, %v632_v62  ;;  %v631_v10 = vrot.slane %v603_v8, %v593_v50 }
 0x170   :  { %1911 = vmatpush3.bf16.xpose.msra.mxu0 %v2384_v57  ;;  %1912 = vmatprep.mubr.msk.bf16.mxu0 %vm2258_vm0, %v2257_v4  ;;  %v648_v11 = vpack.c.bf16 %v617_v9, %v617_v9  ;;  %v633_v15 = vcombine.high %v617_v9, %v617_v9 }
 0x171   :  { %1907 = vmatmul.mubr.bf16.vlgmr.msra.gmra.mrb[4].mxu1 %v645_v59  ;;  %1922 = vmatprep.subr.bf16.mxu0 %v2257_v4  ;;  %v647_v3 = vpack.c.bf16 %v634_v63, %v634_v63  ;;  %v649_v13 = vpack.c.bf16 %v631_v10, %v631_v10  ;;  %v635_v16 = vcombine.high %v631_v10, %v631_v10 }
 0x172   :  { %1917 = vmatpush3.bf16.xpose.msra.mxu1 %v2389_v60  ;;  %1918 = vmatprep.mubr.msk.bf16.mxu1 %vm2258_vm0, %v2257_v4  ;;  %v650_v17 = vpack.c.bf16 %v633_v15, %v633_v15 }
 0x173   :  { %1928 = vmatprep.subr.bf16.mxu1 %v2257_v4  ;;  %v651_v18 = vpack.c.bf16 %v635_v16, %v635_v16 }
 0x177   :  { %1913 = vmatmul.mubr.bf16.vlgmr.msra.gmra.mrb[8].mxu0 %v646_v1 }
 0x178   :  { %1923 = vmatpush3.bf16.xpose.msra.mxu0 %v2404_v2  ;;  %1924 = vmatprep.mubr.msk.bf16.mxu0 %vm2258_vm0, %v2257_v4 }
 0x179   :  { %1919 = vmatmul.mubr.bf16.vlgmr.msra.gmra.mrb[8].mxu1 %v647_v3  ;;  %1934 = vmatprep.subr.bf16.mxu0 %v2257_v4 }
 0x17a   :  { %1929 = vmatpush3.bf16.xpose.msra.mxu1 %v2409_v7  ;;  %1930 = vmatprep.mubr.msk.bf16.mxu1 %vm2258_vm0, %v2257_v4 }
 0x17b   :  { %1940 = vmatprep.subr.bf16.mxu1 %v2257_v4 }
 0x17f   :  { %1925 = vmatmul.mubr.bf16.vlgmr.msra.gmra.mrb[12].mxu0 %v648_v11 }
 0x180   :  { %1935 = vmatpush3.bf16.xpose.msra.mxu0 %v2422_v12  ;;  %1936 = vmatprep.mubr.msk.bf16.mxu0 %vm2258_vm0, %v2257_v4 }
 0x181   :  { %1931 = vmatmul.mubr.bf16.vlgmr.msra.gmra.mrb[12].mxu1 %v649_v13  ;;  %1946 = vmatprep.subr.bf16.mxu0 %v2257_v4 }
 0x182   :  { %1941 = vmatpush3.bf16.xpose.msra.mxu1 %v2427_v14  ;;  %1942 = vmatprep.mubr.msk.bf16.mxu1 %vm2258_vm0, %v2257_v4 }
 0x183   :  { %1952 = vmatprep.subr.bf16.mxu1 %v2257_v4 }
 0x187   :  { %1937 = vmatmul.mubr.bf16.vlgmr.msra.gmra.mrb[16].mxu0 %v650_v17 }
 0x188   :  { %1948 = vmatprep.mubr.msk.bf16.mxu0 %vm2258_vm0, %v2257_v4 }
 0x189   :  { %1943 = vmatmul.mubr.bf16.vlgmr.msra.gmra.mrb[16].mxu1 %v651_v18 }
 0x18a   :  { %1954 = vmatprep.mubr.msk.bf16.mxu1 %vm2258_vm0, %v2257_v4 }
 0x242   :  { %v2441_v19 = vpop.f32.mrb[4].mxu0 }
 0x243   :  { %v1902_v20 = vpop.f32.mrb[5].mxu0 }
 0x244   :  { %v689_v21 = vpop.f32.mrb[6].mxu0  ;;  %v726_v22 = vpop.f32.mrb[4].mxu1 }
 0x245   :  { %v980_v23 = vrot.slane %v726_v22, 7  ;;  %v1903_v24 = vpop.f32.mrb[7].mxu0  ;;  %v1908_v25 = vpop.f32.mrb[5].mxu1 }
 0x246   :  { %v729_v26 = vpop.f32.mrb[6].mxu1 }
 0x247   :  { %v982_v27 = vsel %vm981_vm1, %v980_v23, %v2441_v19  ;;  %v1909_v28 = vpop.f32.mrb[7].mxu1 }
 0x24a   :  { %v766_v29 = vpop.f32.mrb[8].mxu0 }
 0x24b   :  { %v983_v30 = vrot.slane %v766_v29, 6  ;;  %v1914_v31 = vpop.f32.mrb[9].mxu0 }
 0x24c   :  { %v769_v32 = vpop.f32.mrb[10].mxu0  ;;  %v806_v33 = vpop.f32.mrb[8].mxu1 }
 0x24d   :  { %v985_v34 = vsel %vm984_vm2, %v983_v30, %v982_v27  ;;  %v986_v35 = vrot.slane %v806_v33, 5  ;;  %v1915_v36 = vpop.f32.mrb[11].mxu0  ;;  %v1920_v37 = vpop.f32.mrb[9].mxu1 }
 0x24e   :  { %v809_v38 = vpop.f32.mrb[10].mxu1 }
 0x24f   :  { %v988_v39 = vsel %vm987_vm3, %v986_v35, %v985_v34  ;;  %v1921_v40 = vpop.f32.mrb[11].mxu1 }
 0x252   :  { %v846_v41 = vpop.f32.mrb[12].mxu0 }
 0x253   :  { %v989_v42 = vrot.slane %v846_v41, 4  ;;  %v1926_v43 = vpop.f32.mrb[13].mxu0 }
 0x254   :  { %v849_v44 = vpop.f32.mrb[14].mxu0  ;;  %v886_v45 = vpop.f32.mrb[12].mxu1 }
 0x255   :  { %v991_v46 = vsel %vm990_vm4, %v989_v42, %v988_v39  ;;  %v992_v47 = vrot.slane %v886_v45, 3  ;;  %v1927_v48 = vpop.f32.mrb[15].mxu0  ;;  %v1932_v49 = vpop.f32.mrb[13].mxu1 }
 0x256   :  { %v889_v50 = vpop.f32.mrb[14].mxu1 }
 0x257   :  { %v1933_v51 = vpop.f32.mrb[15].mxu1  ;;  %v994_v53 = vsel %vm993_vm5, %v992_v47, %v991_v46 }
 0x25a   :  { %v926_v54 = vpop.f32.mrb[16].mxu0 }
 0x25b   :  { %v995_v55 = vrot.slane %v926_v54, 2  ;;  %v1938_v56 = vpop.f32.mrb[17].mxu0 }
 0x25c   :  { %v929_v58 = vpop.f32.mrb[18].mxu0  ;;  %v966_v59 = vpop.f32.mrb[16].mxu1 }
 0x25d   :  { %v998_v61 = vrot.slane %v966_v59, 1  ;;  %v1939_v62 = vpop.f32.mrb[19].mxu0  ;;  %v1944_v63 = vpop.f32.mrb[17].mxu1  ;;  %v997_v0 = vsel %vm996_vm6, %v995_v55, %v994_v53 }
 0x25e   :  { %v969_v1 = vpop.f32.mrb[18].mxu1  ;;  %v1117_v62 = vsel %vm1115_vm9, %v2349_v5, 0  ;;  %v1163_v63 = vsel %vm1115_vm9, %v2356_v6, 0 }
 0x25f   :  { %v1945_v3 = vpop.f32.mrb[19].mxu1  ;;  %v1000_v8 = vsel %vm999_vm7, %v998_v61, %v997_v0  ;;  %1947 = vmatpush3.bf16.msra.mxu0 %v1117_v62  ;;  %1953 = vmatpush3.bf16.msra.mxu1 %v1163_v63 }
 0x260   :  { %v1003_v9 = vsel %vm1002_vm8, %v1000_v8, -inf  ;;  %1958 = vmatprep.subr.bf16.mxu0 %v2257_v4  ;;  %1964 = vmatprep.subr.bf16.mxu1 %v2257_v4 }
 0x261   :  { %1004 = vmax.xlane.f32.xlu0 %v1003_v9 }
 0x2ee   :  { %v1005_v10 = vpop.xlane.xlu0 %1004 }
 0x2ef   :  { %v1007_v11 = vrot.slane %v1005_v10, 1  ;;  %v1008_v13 = vrot.slane %v1005_v10, 2  ;;  %v1009_v15 = vrot.slane %v1005_v10, 3  ;;  %v1010_v16 = vrot.slane %v1005_v10, 4 }
 0x2f0   :  { %v1011_v17 = vrot.slane %v1005_v10, 5  ;;  %v1012_v18 = vrot.slane %v1005_v10, 6  ;;  %v1013_v20 = vrot.slane %v1005_v10, 7  ;;  %v1022_v21 = vsub.f32 %v2441_v19, %v1005_v10 }
 0x2f1   :  { %v1023_v23 = vsub.f32 %v726_v22, %v1007_v11  ;;  %v1024_v24 = vsub.f32 %v766_v29, %v1008_v13  ;;  %v1025_v25 = vsub.f32 %v806_v33, %v1009_v15  ;;  %v1026_v26 = vsub.f32 %v846_v41, %v1010_v16 }
 0x2f2   :  { %v1027_v27 = vsub.f32 %v886_v45, %v1011_v17  ;;  %v1030_v28 = vmul.f32 1.442695, %v1022_v21  ;;  %v1028_v30 = vsub.f32 %v926_v54, %v1012_v18  ;;  %v1029_v35 = vsub.f32 %v966_v59, %v1013_v20 }
 0x2f3   :  { %v1032_v31 = vmul.f32 1.442695, %v1023_v23  ;;  %v1034_v32 = vmul.f32 1.442695, %v1024_v24  ;;  %v1036_v34 = vmul.f32 1.442695, %v1025_v25 }
 0x2f4   :  { %2171 = vpow2.f32 %v1030_v28  ;;  %v1038_v36 = vmul.f32 1.442695, %v1026_v26  ;;  %v1040_v37 = vmul.f32 1.442695, %v1027_v27  ;;  %v1042_v38 = vmul.f32 1.442695, %v1028_v30 }
 0x2f5   :  { %2173 = vpow2.f32 %v1032_v31  ;;  %v1044_v39 = vmul.f32 1.442695, %v1029_v35  ;;  %v1209_v16 = vsel %vm1115_vm9, %v2384_v57, 0  ;;  %v1255_v20 = vsel %vm1115_vm9, %v2389_v60, 0 }
 0x2f6   :  { %2175 = vpow2.f32 %v1034_v32  ;;  %v1301_v26 = vsel %vm1115_vm9, %v2404_v2, 0  ;;  %v1347_v30 = vsel %vm1115_vm9, %v2409_v7, 0 }
 0x2f7   :  { %2177 = vpow2.f32 %v1036_v34  ;;  %v1393_v34 = vsel %vm1115_vm9, %v2422_v12, 0 }
 0x2f8   :  { %2179 = vpow2.f32 %v1038_v36 }
 0x2f9   :  { %2181 = vpow2.f32 %v1040_v37  ;;  %v1439_v37 = vsel %vm1115_vm9, %v2427_v14, 0  ;;  %v2139_v14 = vld [vmem:[#allocation4] sm:$0xff]  }
 0x2fa   :  { %2183 = vpow2.f32 %v1042_v38 }
 0x2fb   :  { %2185 = vpow2.f32 %v1044_v39 }
 0x2fe   :  { %v2172_v19 = vpop.eup %2171 }
 0x2ff   :  { %v2174_v22 = vpop.eup %2173 }
 0x300   :  { %v2176_v29 = vpop.eup %2175  ;;  %v1054_v33 = vrot.slane %v2174_v22, 7 }
 0x301   :  { %v2178_v40 = vpop.eup %2177  ;;  %v1056_v41 = vrot.slane %v2176_v29, 6 }
 0x302   :  { %v2453_v42 = vpop.eup %2179  ;;  %v1055_v43 = vsel %vm981_vm1, %v1054_v33, %v2172_v19  ;;  %v1058_v44 = vrot.slane %v2178_v40, 5  ;;  %v2141_v33 = vld [vmem:[#allocation4 + $0x10] sm:$0xff]  }
 0x303   :  { %v2456_v45 = vpop.eup %2181  ;;  %v1057_v46 = vsel %vm984_vm2, %v1056_v41, %v1055_v43  ;;  %v1060_v47 = vrot.slane %v2453_v42, 4  ;;  %v2143_v41 = vld [vmem:[#allocation4 + $0x20] sm:$0xff]   ;;  %v2145_v43 = vld [vmem:[#allocation4 + $0x30] sm:$0xff]  }
 0x304   :  { %v2460_v48 = vpop.eup %2183  ;;  %v1059_v49 = vsel %vm987_vm3, %v1058_v44, %v1057_v46  ;;  %v1062_v50 = vrot.slane %v2456_v45, 3  ;;  %v2146_v44 = vld [vmem:[#allocation4 + $0x38] sm:$0xff]   ;;  %v2147_v46 = vld [vmem:[%s2583_s5] sm:$0xff]  }
 0x305   :  { %v2464_v51 = vpop.eup %2185  ;;  %v1061_v53 = vsel %vm990_vm4, %v1060_v47, %v1059_v49  ;;  %v1064_v54 = vrot.slane %v2460_v48, 2  ;;  %v2148_v47 = vld [vmem:[%s2583_s5 + $0x8] sm:$0xff]   ;;  %v2151_v49 = vld [vmem:[%s2583_s5 + $0x20] sm:$0xff]  }
 0x306   :  { %v1063_v55 = vsel %vm993_vm5, %v1062_v50, %v1061_v53  ;;  %v1066_v56 = vrot.slane %v2464_v51, 1  ;;  %v2152_v50 = vld [vmem:[%s2583_s5 + $0x28] sm:$0xff]   ;;  %v2154_v53 = vld [vmem:[%s2583_s5 + $0x38] sm:$0xff]  }
 0x307   :  { %v1065_v58 = vsel %vm996_vm6, %v1064_v54, %v1063_v55 }
 0x308   :  { %v1067_v59 = vsel %vm999_vm7, %v1066_v56, %v1065_v58 }
 0x309   :  { %v1069_v61 = vsel %vm1002_vm8, %v1067_v59, 0.0 }
 0x30a   :  { %1070 = vadd.xlane.f32.xlu0 %v1069_v61 }
 0x397   :  { %v1071_v0 = vpop.xlane.xlu0 %1070 }
 0x398   :  { %v1073_v1 = vrot.slane %v1071_v0, 1  ;;  %v1074_v3 = vrot.slane %v1071_v0, 2  ;;  %2187 = vrcp.f32 %v1071_v0  ;;  %v1075_v8 = vrot.slane %v1071_v0, 3 }
 0x399   :  { %v1076_v9 = vrot.slane %v1071_v0, 4  ;;  %v1077_v10 = vrot.slane %v1071_v0, 5  ;;  %v1078_v23 = vrot.slane %v1071_v0, 6  ;;  %v1079_v24 = vrot.slane %v1071_v0, 7 }
 0x39a   :  { %2189 = vrcp.f32 %v1073_v1 }
 0x39b   :  { %2191 = vrcp.f32 %v1074_v3 }
 0x39c   :  { %2193 = vrcp.f32 %v1075_v8 }
 0x39d   :  { %2195 = vrcp.f32 %v1076_v9 }
 0x39e   :  { %2197 = vrcp.f32 %v1077_v10 }
 0x39f   :  { %2199 = vrcp.f32 %v1078_v23 }
 0x3a0   :  { %2201 = vrcp.f32 %v1079_v24 }
 0x3a2   :  { %v2188_v5 = vpop.eup %2187 }
 0x3a3   :  { %v1089_v13 = vmul.f32 %v2188_v5, %v2172_v19 }
 0x3a4   :  { %v2190_v11 = vpop.eup %2189 }
 0x3a5   :  { %v1091_v6 = vmul.f32 %v2190_v11, %v2174_v22  ;;  %v1104_v15 = vpack.c.bf16 %v1089_v13, %v1089_v13  ;;  %v2192_v17 = vpop.eup %2191 }
 0x3a6   :  { %v2194_v21 = vpop.eup %2193  ;;  %v1093_v25 = vmul.f32 %v2192_v17, %v2176_v29  ;;  %v2140_v29 = vld [vmem:[#allocation4 + $0x8] sm:$0xff]  }
 0x3a7   :  { %v1105_v18 = vpack.c.bf16 %v1091_v6, %v1091_v6  ;;  %1949 = vmatmul.mubr.msk.bf16.vlgmr.msra.gmra.mrb[20].mxu0 %vm1002_vm8, %v1104_v15  ;;  %v1095_v57 = vmul.f32 %v2194_v21, %v2178_v40  ;;  %v2196_v27 = vpop.eup %2195  ;;  %v2142_v40 = vld [vmem:[#allocation4 + $0x18] sm:$0xff]  }
 0x3a8   :  { %1959 = vmatpush3.bf16.msra.mxu0 %v1209_v16  ;;  %1960 = vmatprep.mubr.msk.bf16.mxu0 %vm2258_vm0, %v2257_v4  ;;  %v1106_v60 = vpack.c.bf16 %v1093_v25, %v1093_v25  ;;  %v2198_v31 = vpop.eup %2197  ;;  %v1097_v32 = vmul.f32 %v2196_v27, %v2453_v42  ;;  %v2144_v42 = vld [vmem:[#allocation4 + $0x28] sm:$0xff]  }
 0x3a9   :  { %1955 = vmatmul.mubr.msk.bf16.vlgmr.msra.gmra.mrb[20].mxu1 %vm1002_vm8, %v1105_v18  ;;  %1970 = vmatprep.subr.bf16.mxu0 %v2257_v4  ;;  %v1107_v28 = vpack.c.bf16 %v1095_v57, %v1095_v57  ;;  %v1099_v2 = vmul.f32 %v2198_v31, %v2456_v45  ;;  %v2200_v35 = vpop.eup %2199  ;;  %v1505_v45 = vpack.c.bf16 %v2374_v52, %v2374_v52  ;;  %v2150_v52 = vld [vmem:[%s2583_s5 + $0x18] sm:$0xff]  }
 0x3aa   :  { %1965 = vmatpush3.bf16.msra.mxu1 %v1255_v20  ;;  %1966 = vmatprep.mubr.msk.bf16.mxu1 %vm2258_vm0, %v2257_v4  ;;  %v1108_v7 = vpack.c.bf16 %v1097_v32, %v1097_v32  ;;  %v2202_v38 = vpop.eup %2201  ;;  %v1101_v39 = vmul.f32 %v2200_v35, %v2460_v48  ;;  %v2149_v48 = vld [vmem:[%s2583_s5 + $0x10] sm:$0xff]  }
 0x3ab   :  { %1976 = vmatprep.subr.bf16.mxu1 %v2257_v4  ;;  %v1109_v36 = vpack.c.bf16 %v1099_v2, %v1099_v2  ;;  %v1103_v12 = vmul.f32 %v2202_v38, %v2464_v51  ;;  %v2153_v51 = vld [vmem:[%s2583_s5 + $0x30] sm:$0xff]  }
 0x3ac   :  { %v1110_v19 = vpack.c.bf16 %v1101_v39, %v1101_v39 }
 0x3ad   :  { %v1111_v22 = vpack.c.bf16 %v1103_v12, %v1103_v12 }
 0x3af   :  { %1961 = vmatmul.mubr.msk.bf16.vlgmr.msra.gmra.mrb[24].mxu0 %vm1002_vm8, %v1106_v60 }
 0x3b0   :  { %1971 = vmatpush3.bf16.msra.mxu0 %v1301_v26  ;;  %1972 = vmatprep.mubr.msk.bf16.mxu0 %vm2258_vm0, %v2257_v4 }
 0x3b1   :  { %1967 = vmatmul.mubr.msk.bf16.vlgmr.msra.gmra.mrb[24].mxu1 %vm1002_vm8, %v1107_v28  ;;  %1982 = vmatprep.subr.bf16.mxu0 %v2257_v4 }
 0x3b2   :  { %1977 = vmatpush3.bf16.msra.mxu1 %v1347_v30  ;;  %1978 = vmatprep.mubr.msk.bf16.mxu1 %vm2258_vm0, %v2257_v4 }
 0x3b3   :  { %1988 = vmatprep.subr.bf16.mxu1 %v2257_v4 }
 0x3b7   :  { %1973 = vmatmul.mubr.msk.bf16.vlgmr.msra.gmra.mrb[28].mxu0 %vm1002_vm8, %v1108_v7 }
 0x3b8   :  { %1983 = vmatpush3.bf16.msra.mxu0 %v1393_v34  ;;  %1984 = vmatprep.mubr.msk.bf16.mxu0 %vm2258_vm0, %v2257_v4 }
 0x3b9   :  { %1979 = vmatmul.mubr.msk.bf16.vlgmr.msra.gmra.mrb[28].mxu1 %vm1002_vm8, %v1109_v36  ;;  %1994 = vmatprep.subr.bf16.mxu0 %v2257_v4 }
 0x3ba   :  { %1989 = vmatpush3.bf16.msra.mxu1 %v1439_v37  ;;  %1990 = vmatprep.mubr.msk.bf16.mxu1 %vm2258_vm0, %v2257_v4 }
 0x3bb   :  { %2014 = vmatprep.subr.bf16.mxu1 %v2257_v4 }
 0x3bf   :  { %1985 = vmatmul.mubr.msk.bf16.vlgmr.msra.gmra.mrb[32].mxu0 %vm1002_vm8, %v1110_v19 }
 0x3c0   :  { %1995 = vmatpush3.bf16.msra.mxu0 %v2139_v14  ;;  %2010 = vmatprep.mubr.msk.bf16.mxu0 %vm2258_vm0, %v2257_v4 }
 0x3c1   :  { %1991 = vmatmul.mubr.msk.bf16.vlgmr.msra.gmra.mrb[32].mxu1 %vm1002_vm8, %v1111_v22  ;;  %1996 = vmatprep.subr.bf16.mxu0 %v2257_v4 }
 0x3c2   :  { %2030 = vmatprep.mubr.msk.bf16.mxu1 %vm2258_vm0, %v2257_v4  ;;  %2015 = vmatpush3.bf16.msra.mxu1 %v2147_v46 }
 0x3c3   :  { %2016 = vmatprep.subr.bf16.mxu1 %v2257_v4 }
 0x3c4   :  { %1997 = vmatpush3.bf16.msra.mxu0 %v2140_v29 }
 0x3c5   :  { %1998 = vmatprep.subr.bf16.mxu0 %v2257_v4 }
 0x3c6   :  { %2017 = vmatpush3.bf16.msra.mxu1 %v2148_v47 }
 0x3c7   :  { %2018 = vmatprep.subr.bf16.mxu1 %v2257_v4 }
 0x3c8   :  { %1999 = vmatpush3.bf16.msra.mxu0 %v2141_v33 }
 0x3c9   :  { %2000 = vmatprep.subr.bf16.mxu0 %v2257_v4 }
 0x3ca   :  { %2019 = vmatpush3.bf16.msra.mxu1 %v2149_v48 }
 0x3cb   :  { %2020 = vmatprep.subr.bf16.mxu1 %v2257_v4 }
 0x3cc   :  { %2001 = vmatpush3.bf16.msra.mxu0 %v2142_v40 }
 0x3cd   :  { %2002 = vmatprep.subr.bf16.mxu0 %v2257_v4 }
 0x3ce   :  { %2021 = vmatpush3.bf16.msra.mxu1 %v2150_v52 }
 0x3cf   :  { %2022 = vmatprep.subr.bf16.mxu1 %v2257_v4 }
 0x3d0   :  { %2003 = vmatpush3.bf16.msra.mxu0 %v2143_v41 }
 0x3d1   :  { %2004 = vmatprep.subr.bf16.mxu0 %v2257_v4 }
 0x3d2   :  { %2023 = vmatpush3.bf16.msra.mxu1 %v2151_v49 }
 0x3d3   :  { %2024 = vmatprep.subr.bf16.mxu1 %v2257_v4 }
 0x3d4   :  { %2005 = vmatpush3.bf16.msra.mxu0 %v2144_v42 }
 0x3d5   :  { %2006 = vmatprep.subr.bf16.mxu0 %v2257_v4 }
 0x3d6   :  { %2025 = vmatpush3.bf16.msra.mxu1 %v2152_v50 }
 0x3d7   :  { %2026 = vmatprep.subr.bf16.mxu1 %v2257_v4 }
 0x3d8   :  { %2007 = vmatpush3.bf16.msra.mxu0 %v2145_v43 }
 0x3d9   :  { %2008 = vmatprep.subr.bf16.mxu0 %v2257_v4 }
 0x3da   :  { %2027 = vmatpush3.bf16.msra.mxu1 %v2153_v51 }
 0x3db   :  { %2028 = vmatprep.subr.bf16.mxu1 %v2257_v4 }
 0x3dc   :  { %2009 = vmatpush3.bf16.msra.mxu0 %v2146_v44 }
 0x3de   :  { %2029 = vmatpush3.bf16.msra.mxu1 %v2154_v53 }
 0x3df   :  { %2011 = vmatmul.mubr.bf16.vlgmr.msra.gmra.mrb[36].mxu0 %v1505_v45 }
 0x47a   :  { %v1153_v54 = vpop.f32.mrb[20].mxu0 }
 0x47b   :  { %v1950_v55 = vpop.f32.mrb[21].mxu0  ;;  %v1481_v58 = vpack.c.bf16 %v1153_v54, %v1153_v54 }
 0x47c   :  { %v1199_v56 = vpop.f32.mrb[20].mxu1  ;;  %v1156_v59 = vpop.f32.mrb[22].mxu0 }
 0x47d   :  { %v1482_v61 = vpack.c.bf16 %v1199_v56, %v1199_v56  ;;  %v1956_v62 = vpop.f32.mrb[21].mxu1  ;;  %v1951_v63 = vpop.f32.mrb[23].mxu0  ;;  %v1618_v8 = vunpack.c.l.b16 %v1481_v58  ;;  %v1847_v59 = vld [vmem:[%s2585_s7] ss:$0 sm:$0xff] }
 0x47e   :  { %v1202_v0 = vpop.f32.mrb[22].mxu1 }
 0x47f   :  { %v1619_v1 = vunpack.c.l.b16 %v1482_v61  ;;  %v1957_v3 = vpop.f32.mrb[23].mxu1 }
 0x481   :  { %v1626_v9 = vrot.slane %v1619_v1, 7 }
 0x482   :  { %v1245_v5 = vpop.f32.mrb[24].mxu0 }
 0x483   :  { %v1627_v10 = vsel %vm981_vm1, %v1626_v9, %v1618_v8  ;;  %v1483_v11 = vpack.c.bf16 %v1245_v5, %v1245_v5  ;;  %v1962_v13 = vpop.f32.mrb[25].mxu0 }
 0x484   :  { %v1291_v4 = vpop.f32.mrb[24].mxu1  ;;  %v1248_v6 = vpop.f32.mrb[26].mxu0 }
 0x485   :  { %v1484_v15 = vpack.c.bf16 %v1291_v4, %v1291_v4  ;;  %v1968_v16 = vpop.f32.mrb[25].mxu1  ;;  %v1620_v17 = vunpack.c.l.b16 %v1483_v11  ;;  %v1963_v18 = vpop.f32.mrb[27].mxu0 }
 0x486   :  { %v1294_v20 = vpop.f32.mrb[26].mxu1 }
 0x487   :  { %v1621_v21 = vunpack.c.l.b16 %v1484_v15  ;;  %v1969_v23 = vpop.f32.mrb[27].mxu1  ;;  %v1628_v24 = vrot.slane %v1620_v17, 6 }
 0x489   :  { %v1630_v25 = vrot.slane %v1621_v21, 5  ;;  %v1629_v57 = vsel %vm984_vm2, %v1628_v24, %v1627_v10 }
 0x48a   :  { %v1337_v26 = vpop.f32.mrb[28].mxu0 }
 0x48b   :  { %v1631_v60 = vsel %vm987_vm3, %v1630_v25, %v1629_v57  ;;  %v1485_v27 = vpack.c.bf16 %v1337_v26, %v1337_v26  ;;  %v1974_v28 = vpop.f32.mrb[29].mxu0 }
 0x48c   :  { %v1383_v30 = vpop.f32.mrb[28].mxu1  ;;  %v1340_v31 = vpop.f32.mrb[30].mxu0 }
 0x48d   :  { %v1486_v32 = vpack.c.bf16 %v1383_v30, %v1383_v30  ;;  %v1980_v2 = vpop.f32.mrb[29].mxu1  ;;  %v1622_v7 = vunpack.c.l.b16 %v1485_v27  ;;  %v1975_v34 = vpop.f32.mrb[31].mxu0 }
 0x48e   :  { %v1386_v35 = vpop.f32.mrb[30].mxu1 }
 0x48f   :  { %v1623_v36 = vunpack.c.l.b16 %v1486_v32  ;;  %v1981_v37 = vpop.f32.mrb[31].mxu1  ;;  %v1632_v38 = vrot.slane %v1622_v7, 4 }
 0x491   :  { %v1634_v39 = vrot.slane %v1623_v36, 3  ;;  %v1633_v12 = vsel %vm990_vm4, %v1632_v38, %v1631_v60 }
 0x492   :  { %v1429_v19 = vpop.f32.mrb[32].mxu0 }
 0x493   :  { %v1635_v14 = vsel %vm993_vm5, %v1634_v39, %v1633_v12  ;;  %v1487_v22 = vpack.c.bf16 %v1429_v19, %v1429_v19  ;;  %v1986_v29 = vpop.f32.mrb[33].mxu0 }
 0x494   :  { %v1475_v33 = vpop.f32.mrb[32].mxu1  ;;  %v1432_v40 = vpop.f32.mrb[34].mxu0 }
 0x495   :  { %v1488_v41 = vpack.c.bf16 %v1475_v33, %v1475_v33  ;;  %v1992_v42 = vpop.f32.mrb[33].mxu1  ;;  %v1624_v43 = vunpack.c.l.b16 %v1487_v22  ;;  %v1987_v44 = vpop.f32.mrb[35].mxu0 }
 0x496   :  { %v1478_v45 = vpop.f32.mrb[34].mxu1 }
 0x497   :  { %v1625_v46 = vunpack.c.l.b16 %v1488_v41  ;;  %v1993_v47 = vpop.f32.mrb[35].mxu1  ;;  %v1636_v48 = vrot.slane %v1624_v43, 2 }
 0x499   :  { %v1638_v52 = vrot.slane %v1625_v46, 1  ;;  %v1637_v49 = vsel %vm996_vm6, %v1636_v48, %v1635_v14 }
 0x49b   :  { %v1639_v50 = vsel %vm999_vm7, %v1638_v52, %v1637_v49 }
 0x49c   :  { %v1640_v51 = vpack.c.b16 %v1639_v50, %v1639_v50 }
 0x49e   :  { %2031 = vmatmul.mubr.bf16.vlgmr.msra.gmra.mrb[36].mxu1 %v1640_v51 }
 0x4b2   :  { %v1604_v53 = vpop.f32.mrb[36].mxu0 }
 0x4b3   :  { %v2012_v54 = vpop.f32.mrb[37].mxu0 }
 0x4b4   :  { %v1607_v55 = vpop.f32.mrb[38].mxu0 }
 0x4b5   :  { %v2013_v56 = vpop.f32.mrb[39].mxu0 }
 0x571   :  { %v1724_v58 = vpop.f32.mrb[36].mxu1 }
 0x572   :  { %v1725_v61 = vadd.f32 %v1724_v58, %v1604_v53  ;;  %v2032_v62 = vpop.f32.mrb[37].mxu1 }
 0x573   :  { %v1727_v63 = vpop.f32.mrb[38].mxu1 }
 0x574   :  { %v1737_v0 = vadd.f32 %v1847_v59, %v1725_v61  ;;  %v2033_v1 = vpop.f32.mrb[39].mxu1 }
 0x576   :  { %v1738_v3 = vpack.c.bf16 %v1737_v0, %v1737_v0 }
 0x578   :  { %1739 = vst [vmem:[%s2586_s8] sm:$0xf] %v1738_v3 }
 0x579   :  { %1754 = vsyncpa [#allocation3], 1 }
 0x57a   :  { %1755 = vsyncpa [#allocation5], 1 }

</bundles_post_ra>
